<compile_context>
chip_gen: v7x
topology: tpu7x:2x2x1
jax: 0.10.0
libtpu: 0.0.40
codegen_flags: <defaults>
</compile_context>

<pallas_src>
import functools

import jax
import jax.numpy as jnp
from jax.experimental import pallas as pl
from jax.experimental.pallas import tpu as pltpu


# ----------------------------------------------------------------------------
# Parameter ("buffer") construction -- mirrors the PyTorch __init__ exactly.
# ----------------------------------------------------------------------------
def build_positional_encoding(d_model: int, max_len: int = 5000) -> jnp.ndarray:
    pos = jnp.arange(max_len, dtype=jnp.float32)[:, None]              # (max_len, 1)
    div_term = 10000.0 ** (jnp.arange(0, d_model, 2, dtype=jnp.float32) / d_model)
    pe = jnp.zeros((max_len, d_model), dtype=jnp.float32)
    pe = pe.at[:, 0::2].set(jnp.sin(pos / div_term))
    pe = pe.at[:, 1::2].set(jnp.cos(pos / div_term))
    return pe


# ----------------------------------------------------------------------------
# Kernels (rank-agnostic elementwise bodies: work for both block layouts)
# ----------------------------------------------------------------------------
def _pe_add_kernel(x_ref, pe_ref, o_ref):
    # (tb, ts, D) + (ts, D)  or  (B, tf) + (1, tf): broadcast add over batch.
    o_ref[...] = (x_ref[...] + pe_ref[...]).astype(o_ref.dtype)


def _pe_add_dropout_hw_kernel(seed_ref, x_ref, pe_ref, o_ref, *,
                              threshold, scale, grid_ndim):
    # TPU-only training path: hardware PRNG, integer-threshold compare.
    # TODO(synk): the random mask cannot match PyTorch's RNG bit-for-bit
    # (only the eval path is bit-exact).
    tile = pl.program_id(0)
    for ax in range(1, grid_ndim):
        tile = tile * pl.num_programs(ax) + pl.program_id(ax)
    pltpu.prng_seed(seed_ref[0] + tile)                 # unique seed per tile
    y = x_ref[...] + pe_ref[...]
    bits = pltpu.prng_random_bits(y.shape)
    if bits.dtype != jnp.uint32:                        # only bitcast if needed
        bits = pltpu.bitcast(bits, jnp.uint32)
    keep = bits >= jnp.uint32(threshold)                # P(keep) = 1 - p
    o_ref[...] = (jnp.where(keep, y, 0.0) * scale).astype(o_ref.dtype)


def _pe_add_dropout_bits_kernel(x_ref, pe_ref, bits_ref, o_ref, *,
                                threshold, scale):
    # Off-TPU fallback: random bits are generated with jax.random and streamed
    # in (the TPU hardware PRNG has no CPU/interpret lowering).
    y = x_ref[...] + pe_ref[...]
    keep = bits_ref[...] >= jnp.uint32(threshold)
    o_ref[...] = (jnp.where(keep, y, 0.0) * scale).astype(o_ref.dtype)


# ----------------------------------------------------------------------------
# Helpers
# ----------------------------------------------------------------------------
def _round_up(x: int, m: int) -> int:
    return ((x + m - 1) // m) * m


def _largest_divisor(total: int, cap: int) -> int:
    """Largest d <= cap that divides total (>=1)."""
    cap = max(1, min(int(cap), int(total)))
    for d in range(cap, 0, -1):
        if total % d == 0:
            return d
    return 1


def _tpu_generation_config():
    """Returns (on_tpu, target_block_bytes, vmem_cap_bytes, want_two_tiles)."""
    try:
        dev = jax.devices()[0]
        platform = dev.platform
        kind = dev.device_kind.lower()
    except Exception:
        platform, kind = "cpu", ""
    on_tpu = platform == "tpu"
    if on_tpu and ("v7" in kind or "7x" in kind):
        # v7x: 64 MiB VMEM / TC, 3.2 TB/s HBM, 2 TCs -> want >=2 tiles.
        return True, 8 << 20, 48 << 20, True
    if on_tpu and ("v6" in kind or "v5" in kind):
        # v5e / v6e: 128 MiB VMEM -> bigger blocks amortize per-step overhead.
        return True, 16 << 20, 100 << 20, False
    # Unknown TPU generation or non-TPU backend: conservative defaults.
    return on_tpu, 8 << 20, 48 << 20, False


# ----------------------------------------------------------------------------
# Wrapper
# ----------------------------------------------------------------------------
def positional_encoding_forward(x, pe, *, dropout_p: float = 0.1,
                                training: bool = False, seed: int = 0,
                                target_block_bytes: int | None = None):
    """x: (B, S, D), pe: (max_len, D).  Returns dropout(x + pe[:S])."""
    B, S, D = x.shape
    on_tpu, auto_target, vmem_cap, want_two = _tpu_generation_config()
    target = int(target_block_bytes) if target_block_bytes is not None else auto_target

    out_dtype = jnp.result_type(x.dtype, pe.dtype)       # PyTorch promotion
    x_item = jnp.dtype(x.dtype).itemsize
    o_item = jnp.dtype(out_dtype).itemsize
    pe_item = jnp.dtype(pe.dtype).itemsize
    sub_x = max(1, 32 // x_item)                         # native sublane count
    sub_o = max(1, 32 // o_item)
    sub_pe = max(1, 32 // pe_item)

    train = bool(training) and float(dropout_p) > 0.0

    if D % 128 == 0:
        # ------------------- 3-D blocking: (tb, ts, D) ----------------------
        row = D * x_item                                  # bytes / (batch,seq) row of x
        min_ts = min(S, 8)
        if B * min_ts * row <= target:
            tb = B
            ts_budget = max(min_ts, target // max(1, B * row))
            if S % 8 == 0:
                ts = 8 * _largest_divisor(S // 8, max(1, ts_budget // 8))
            elif S <= ts_budget or S < 8:
                ts = S
            else:
                ts = max(8, (ts_budget // 8) * 8)
        else:
            ts = min_ts
            tb = _largest_divisor(B, max(1, target // max(1, ts * row)))
        nb, ns = pl.cdiv(B, tb), pl.cdiv(S, ts)
        if want_two and nb * ns == 1:                     # feed both v7x TCs
            if S % 16 == 0:
                ts, ns = S // 2, 2
            elif B >= 2:
                tb = pl.cdiv(B, 2)
                nb = pl.cdiv(B, tb)

        grid = (nb, ns)
        dim_sem = ("parallel", "parallel")
        x_spec = pl.BlockSpec((tb, ts, D), lambda b, s, *_: (b, s, 0))
        pe_spec = pl.BlockSpec((ts, D), lambda b, s, *_: (s, 0))
        out_spec = pl.BlockSpec((tb, ts, D), lambda b, s, *_: (b, s, 0))
        out_struct = jax.ShapeDtypeStruct((B, S, D), out_dtype)

        x_op = x
        # Avoid the pe[:S] HBM copy whenever the block shape allows reading
        # straight out of the full buffer.
        pe_op = pe if (ts % 8 == 0) else pe[:S]

        x_blk = tb * _round_up(ts, sub_x) * D * x_item
        o_blk = tb * _round_up(ts, sub_o) * D * o_item
        pe_blk = _round_up(ts, sub_pe) * D * pe_item
        bits_blk = tb * _round_up(ts, 8) * D * 4
        reshape_out = lambda o: o
    else:
        # ------------- flattened lane-dense 2-D blocking: (B, tf) -----------
        F = S * D
        B_pad = _round_up(B, sub_x)                       # sublane padding aware
        if F % 128 == 0:
            max_k = max(1, target // max(1, B_pad * 128 * x_item))
            tf = 128 * _largest_divisor(F // 128, max_k)  # exact tiling: tf | F
        else:
            tf = F                                        # full extent (legal)
        nt = pl.cdiv(F, tf)
        if want_two and nt == 1 and F % 256 == 0:         # feed both v7x TCs
            tf, nt = F // 2, 2

        grid = (nt,)
        dim_sem = ("parallel",)
        x_spec = pl.BlockSpec((B, tf), lambda t, *_: (0, t))
        pe_spec = pl.BlockSpec((1, tf), lambda t, *_: (0, t))
        out_spec = pl.BlockSpec((B, tf), lambda t, *_: (0, t))
        out_struct = jax.ShapeDtypeStruct((B, F), out_dtype)

        x_op = x.reshape(B, F)
        pe_op = pe[:S].reshape(1, F)

        tf_pad = _round_up(tf, 128)
        x_blk = B_pad * tf_pad * x_item
        o_blk = _round_up(B, sub_o) * tf_pad * o_item
        pe_blk = sub_pe * tf_pad * pe_item
        bits_blk = _round_up(B, 8) * tf_pad * 4
        reshape_out = lambda o: o.reshape(B, S, D)

    # --- explicit VMEM budget (double-buffered blocks, padding-aware) -------
    footprint = 2 * (x_blk + o_blk + pe_blk + (bits_blk if (train and not on_tpu) else 0))
    vmem_limit = int(min(max(2 * footprint, 8 << 20), vmem_cap))
    cparams = pltpu.CompilerParams(
        dimension_semantics=dim_sem,
        vmem_limit_bytes=vmem_limit,
    )

    # ------------------------------- eval path ------------------------------
    if not train:
        out = pl.pallas_call(
            _pe_add_kernel,
            out_shape=out_struct,
            grid=grid,
            in_specs=[x_spec, pe_spec],
            out_specs=out_spec,
            compiler_params=cparams,
        )(x_op, pe_op)
        return reshape_out(out)

    # ----------------------------- training path ----------------------------
    p = float(dropout_p)
    if p >= 1.0:
        return jnp.zeros((B, S, D), out_dtype)
    # Drop iff bits < threshold; P(drop) = threshold / 2^32 ~= p.
    threshold = min(int(round(p * (1 << 32))), (1 << 32) - 1)
    scale = 1.0 / (1.0 - p)

    if on_tpu:
        grid_spec = pltpu.PrefetchScalarGridSpec(
            num_scalar_prefetch=1,
            grid=grid,
            in_specs=[x_spec, pe_spec],
            out_specs=out_spec,
        )
        out = pl.pallas_call(
            functools.partial(_pe_add_dropout_hw_kernel, threshold=threshold,
                              scale=scale, grid_ndim=len(grid)),
            out_shape=out_struct,
            grid_spec=grid_spec,
            compiler_params=cparams,
        )(jnp.array([seed], dtype=jnp.int32), x_op, pe_op)
    else:
        bits = jax.random.bits(jax.random.PRNGKey(seed), x_op.shape, jnp.uint32)
        out = pl.pallas_call(
            functools.partial(_pe_add_dropout_bits_kernel, threshold=threshold,
                              scale=scale),
            out_shape=out_struct,
            grid=grid,
            in_specs=[x_spec, pe_spec, x_spec],           # bits tiled like x
            out_specs=out_spec,
            compiler_params=cparams,
        )(x_op, pe_op, bits)
    return reshape_out(out)


# ----------------------------------------------------------------------------
# Demo / self-test
# ----------------------------------------------------------------------------
if __name__ == "__main__":
    key = jax.random.PRNGKey(0)
    k1, k2, k3 = jax.random.split(key, 3)

    # --- 1) Base demo shape (eval mode, bit-comparable to reference) --------
    B, S, D = 2, 8, 32
    MAX_LEN = 64   # smaller than 5000 to keep the example tiny; semantics identical
    x = jax.random.normal(k1, (B, S, D), dtype=jnp.float32)
    pe = build_positional_encoding(D, MAX_LEN)
    out = positional_encoding_forward(x, pe, dropout_p=0.1, training=False)
    out = jax.block_until_ready(out)
    ref = x + pe[:S][None, :, :]
    assert out.shape == x.shape and out.dtype == x.dtype
    assert jnp.allclose(out, ref, atol=1e-6, rtol=1e-6), "eval mismatch (base)"

    # --- 2) D % 128 == 0 -> 3-D blocking; tiny budget forces multiple tiles -
    B2, S2, D2 = 2, 16, 128
    x2 = jax.random.normal(k2, (B2, S2, D2), dtype=jnp.float32)
    pe2 = build_positional_encoding(D2, 32)
    out2 = positional_encoding_forward(x2, pe2, dropout_p=0.1, training=False,
                                       target_block_bytes=2048)
    out2 = jax.block_until_ready(out2)
    ref2 = x2 + pe2[:S2][None, :, :]
    assert jnp.allclose(out2, ref2, atol=1e-6, rtol=1e-6), "eval mismatch (3-D tiled)"

    # --- 3) Small odd shape, full-extent block (F not multiple of 128) ------
    B3, S3, D3 = 3, 7, 10
    x3 = jax.random.normal(k3, (B3, S3, D3), dtype=jnp.float32)
    pe3 = build_positional_encoding(D3, 16)
    out3 = positional_encoding_forward(x3, pe3, dropout_p=0.1, training=False)
    out3 = jax.block_until_ready(out3)
    ref3 = x3 + pe3[:S3][None, :, :]
    assert jnp.allclose(out3, ref3, atol=1e-6, rtol=1e-6), "eval mismatch (odd)"

    # --- 4) Training-mode dropout (2-D path): shape / scaling / zeros -------
    out_tr = positional_encoding_forward(x, pe, dropout_p=0.1, training=True, seed=7)
    out_tr = jax.block_until_ready(out_tr)
    assert out_tr.shape == x.shape and out_tr.dtype == x.dtype
    assert bool(jnp.all(jnp.isfinite(out_tr)))
    kept = out_tr != 0.0
    assert jnp.allclose(jnp.where(kept, out_tr, 0.0),
                        jnp.where(kept, ref / (1.0 - 0.1), 0.0),
                        atol=1e-5, rtol=1e-5), "training-mode scaling mismatch (2-D)"

    # --- 5) Training-mode dropout (3-D path) --------------------------------
    out_tr2 = positional_encoding_forward(x2, pe2, dropout_p=0.2, training=True, seed=11)
    out_tr2 = jax.block_until_ready(out_tr2)
    assert out_tr2.shape == x2.shape and out_tr2.dtype == x2.dtype
    kept2 = out_tr2 != 0.0
    assert jnp.allclose(jnp.where(kept2, out_tr2, 0.0),
                        jnp.where(kept2, ref2 / (1.0 - 0.2), 0.0),
                        atol=1e-5, rtol=1e-5), "training-mode scaling mismatch (3-D)"

    print("KERNEL_OK")
</pallas_src>

<mosaic_0001>
module attributes {stable_mosaic.version = 11 : i64} {
  func.func @_pe_add_kernel(%arg0: i32, %arg1: memref<2x256xf32, #tpu.memory_space<vmem>>, %arg2: memref<1x256xf32, #tpu.memory_space<vmem>>, %arg3: memref<2x256xf32, #tpu.memory_space<vmem>>) attributes {dimension_semantics = [#tpu.dimension_semantics<parallel>], iteration_bounds = array<i64: 1>, scalar_prefetch = 0 : i64, scratch_operands = 0 : i64, tpu.core_type = #tpu.core_type<tc>, window_params = [{transform_indices = @transform_0, window_bounds = array<i64: 2, 256>}, {transform_indices = @transform_1, window_bounds = array<i64: 1, 256>}, {transform_indices = @transform_2, window_bounds = array<i64: 2, 256>}]} {
    %c0 = arith.constant 0 : index
    %c0_0 = arith.constant 0 : index
    %0 = vector.load %arg1[%c0, %c0_0] : memref<2x256xf32, #tpu.memory_space<vmem>>, vector<2x256xf32>
    %c0_1 = arith.constant 0 : index
    %c0_2 = arith.constant 0 : index
    %1 = vector.load %arg2[%c0_1, %c0_2] : memref<1x256xf32, #tpu.memory_space<vmem>>, vector<1x256xf32>
    %2 = vector.broadcast %1 : vector<1x256xf32> to vector<2x256xf32>
    %3 = arith.addf %0, %2 : vector<2x256xf32>
    %c0_3 = arith.constant 0 : index
    %c0_4 = arith.constant 0 : index
    %4 = vector.load %arg3[%c0_3, %c0_4] : memref<2x256xf32, #tpu.memory_space<vmem>>, vector<2x256xf32>
    tpu.vector_store %arg3[%c0_3, %c0_4], %3 {strides = array<i32>} : memref<2x256xf32, #tpu.memory_space<vmem>>, vector<2x256xf32>,
    return
  }
  func.func @transform_0(%arg0: i32) -> (i32, i32) {
    %c0_i32 = arith.constant 0 : i32
    %c0_i32_0 = arith.constant 0 : i32
    return %c0_i32, %arg0 : i32, i32
  }
  func.func @transform_1(%arg0: i32) -> (i32, i32) {
    %c0_i32 = arith.constant 0 : i32
    %c0_i32_0 = arith.constant 0 : i32
    return %c0_i32, %arg0 : i32, i32
  }
  func.func @transform_2(%arg0: i32) -> (i32, i32) {
    %c0_i32 = arith.constant 0 : i32
    %c0_i32_0 = arith.constant 0 : i32
    return %c0_i32, %arg0 : i32, i32
  }
}

</mosaic_0001>

<bundles_post_ra>
// kernel: tpu_custom_call.1
= control target key start
LH: loop header
LB: loop body
LE: loop exit
PB: predicated region body
PF: predicated region fallthrough
CT: control target
= control target key end

     0   :  { %7 = vsyncpa [#allocation3], 0  ;;  %s157_s0 = inlined_call_operand.hbm [shape: f32[2,256], index: 0, kind: input, shape index: {}]   ;;  %s158_s1 = inlined_call_operand.vmem [shape: f32[1,256], index: 1, kind: input, shape index: {}]   ;;  %s159_s2 = inlined_call_operand.hbm [shape: f32[2,256], index: 2, kind: output, shape index: {}]  }
   0x1   :  { %8 = vsyncpa [#allocation4], 0  ;;  %s112_s9 = smov [#allocation2]   ;;  %s64_s13 = scalar_lea.hbm %s157_s0, 64 }
   0x2   :  { %s15_s10 = sshll.u32 %s112_s9, 4  ;;  %p65_p0 = scmp.ne.s32.totalorder %s157_s0, %s64_s13  ;;  %s16_s10 = int_to_ptr.vmem [resolvable:$true] %s15_s10 }
   0x3   :  { %p68_p1 = scmp.lt.u32.totalorder %s64_s13, %s157_s0 }
   0x5   :  { %p70_p2 = pnand %p68_p1, %p65_p0 }
   0x7   :  { %73 = shalt.err (!%p70_p2)
}
   0x8   :  { %s74_s18 = scalar_lea.vmem %s16_s10, 64  ;;  %p79_p4 = scmp.lt.s32.totalorder %s16_s10, %s16_s10 }
   0x9   :  { %p75_p3 = scmp.ne.s32.totalorder %s16_s10, %s74_s18  ;;  %p80_p5 = scmp.lt.s32.totalorder %s74_s18, %s74_s18 }
   0xb   :  { %p81_p6 = por %p80_p5, %p79_p4 }
   0xd   :  { %p82_p7 = pnand %p81_p6, %p75_p3 }
   0xf   :  { %85 = shalt.err (!%p82_p7)
}
  0x10   :  { %18 = dma.hbm_to_vmem [thread:$0]  %s157_s0, 64, %s16_s10, [#allocation3]  }
  0x11   :  { %108 = dma.done.wait [#allocation3], 64  }
  0x12   :  { %109 = vsyncadd [#allocation3], 4294967232  ;;  %v27_v0 = vlaneseq  ;;  %v113_v1 = vmov 1983009808   ;;  %v25_v7 = vld [vmem:[%s158_s1] sm:$0x3] }
  0x13   :  { %v37_v2 = vunpack.c.l.s4 %v113_v1  ;;  %v24_v12 = vld [vmem:[#allocation2] sm:$0xf]  ;;  %s114_s23 = smov [#allocation5]  }
  0x14   :  { %v28_v3 = vshrl.u32 %v27_v0, 7  ;;  %s52_s0 = sshll.u32 %s114_s23, 4  ;;  %s53_s0 = int_to_ptr.vmem [resolvable:$true] %s52_s0 }
  0x15   :  { %v38_v6 = vunpack.c.0.s8 %v37_v2  ;;  %s86_s24 = scalar_lea.vmem %s53_s0, 64  ;;  %p91_p9 = scmp.lt.s32.totalorder %s53_s0, %s53_s0 }
  0x16   :  { %v29_v4 = vsub.s32 0, %v28_v3  ;;  %v33_v5 = vsub.s32 1, %v28_v3  ;;  %p87_p8 = scmp.ne.s32.totalorder %s53_s0, %s86_s24  ;;  %p92_p10 = scmp.lt.s32.totalorder %s86_s24, %s86_s24 }
  0x17   :  { %v41_v10 = vsub.s32 %v38_v6, %v28_v3 }
  0x18   :  { %v30_v8 = vrot.slane %v25_v7, %v29_v4  ;;  %v34_v9 = vrot.slane %v25_v7, %v33_v5  ;;  %p93_p11 = por %p92_p10, %p91_p9 }
  0x1a   :  { %v35_v11 = vcombine.low %v30_v8, %v34_v9  ;;  %p94_p12 = pnand %p93_p11, %p87_p8 }
  0x1c   :  { %v42_v13 = vrot.slane %v35_v11, %v41_v10 }
  0x1e   :  { %v44_v14 = vadd.f32 %v42_v13, %v24_v12 }
  0x20   :  { %45 = vst [vmem:[#allocation5] sm:$0xf] %v44_v14 }
  0x21   :  { %97 = shalt.err (!%p94_p12)
}
  0x22   :  { %s98_s26 = scalar_lea.hbm %s159_s2, 64 }
  0x23   :  { %p99_p13 = scmp.ne.s32.totalorder %s159_s2, %s98_s26  ;;  %p102_p0 = scmp.lt.u32.totalorder %s98_s26, %s159_s2 }
  0x25   :  { %p104_p1 = pnand %p102_p0, %p99_p13 }
  0x27   :  { %107 = shalt.err (!%p104_p1)
}
  0x28   :  { %55 = dma.vmem_to_hbm [thread:$0]  %s53_s0, 64, %s159_s2, [#allocation4]  }
  0x29   :  { %110 = dma.done.wait [#allocation4], 64  }
  0x2a   :  { %111 = vsyncadd [#allocation4], 4294967232 }
  0x2b   :  { %59 = vsyncpa [#allocation3], 1 }
  0x2c   :  { %60 = vsyncpa [#allocation4], 1 }

</bundles_post_ra>
